<compile_context>
chip_gen: v5e
topology: v5e:2x2
jax: 0.10.0
libtpu: 0.0.40
codegen_flags: <defaults>
</compile_context>

<pallas_src>
import functools

import jax
import jax.numpy as jnp
import numpy as np
from jax.experimental import pallas as pl
from jax.experimental.pallas import tpu as pltpu


# ----------------------------------------------------------------------------
# Host-side (numpy, cached) construction of the fused centered-IFFT matrices.
# ----------------------------------------------------------------------------
def _centered_ifft_matrix_np(m):
    """m x m complex matrix W with W @ y == fftshift(ifft_ortho(ifftshift(y)))."""
    eye = np.eye(m, dtype=np.complex128)
    w = np.fft.ifftshift(eye, axes=0)
    w = np.fft.ifft(w, axis=0, norm="ortho")
    w = np.fft.fftshift(w, axes=0)
    return w


@functools.lru_cache(maxsize=None)
def _dft_mats_np(nx, ny):
    """Cached real matrices: interleave perm, mask expand, fused Wy, block Wx."""
    wx = _centered_ifft_matrix_np(nx)              # (nx, nx) complex
    wy_t = _centered_ifft_matrix_np(ny).T          # (ny, ny) complex (transposed)
    axr = wx.real.astype(np.float32)
    axi = wx.imag.astype(np.float32)
    byr = wy_t.real.astype(np.float32)
    byi = wy_t.imag.astype(np.float32)
    j = np.arange(ny)

    # Planar [Re | Im] columns -> lane-interleaved (r0,i0,r1,i1,...). Exact 0/1.
    p_il = np.zeros((2 * ny, 2 * ny), dtype=np.float32)
    p_il[j, 2 * j] = 1.0
    p_il[ny + j, 2 * j + 1] = 1.0

    # Compact mask -> interleaved (duplicate each lane into a re/im pair).
    e_m = np.zeros((ny, 2 * ny), dtype=np.float32)
    e_m[j, 2 * j] = 1.0
    e_m[j, 2 * j + 1] = 1.0

    # Column (ny) centered IFFT with the de-interleave folded in.
    # Columns [0:ny) give Re, [ny:2ny) give Im of (out_complex @ Wy^T).
    wy_cat = np.zeros((2 * ny, 2 * ny), dtype=np.float32)
    wy_cat[0::2, :ny] = byr
    wy_cat[1::2, :ny] = -byi
    wy_cat[0::2, ny:] = byi
    wy_cat[1::2, ny:] = byr

    # Row (nx) centered IFFT as one real block matrix on [Re; Im] row-stacked data.
    wx_blk = np.block([[axr, -axi], [axi, axr]]).astype(np.float32)   # (2nx, 2nx)
    return p_il, e_m, wy_cat, wx_blk


# ----------------------------------------------------------------------------
# Kernel: per grid step handles B images (DC + centered IFFT2).
# ----------------------------------------------------------------------------
def _dc_ifft_kernel(k_ref, k0_ref, m_ref, p_ref, em_ref, wy_ref, wx_ref,
                    out_ref, xres_ref):
    B = k_ref.shape[0]
    nx = k_ref.shape[2]
    ny = k_ref.shape[3]
    f32 = jnp.float32

    k_all = k_ref[...]                    # (B, 2, nx, ny) channel-planar
    k_re = k_all[:, 0]                    # (B, nx, ny)
    k_im = k_all[:, 1]                    # (B, nx, ny)
    m = m_ref[...]                        # (B, nx, ny) compact mask
    km = 1.0 - m

    # (1 - m) applied in the planar domain (VPU, compact mask), then
    # lane-interleaved with one exact 0/1 permutation matmul.
    lhs1 = jnp.concatenate([km * k_re, km * k_im], axis=-1)           # (B, nx, 2ny)
    lhs1 = lhs1.reshape(B * nx, 2 * ny)
    k_dc_il = jnp.dot(lhs1, p_ref[...], preferred_element_type=f32)   # (B*nx, 2ny)

    # Expand the compact mask to the interleaved layout (exact 0/1 matmul).
    m_il = jnp.dot(m.reshape(B * nx, ny), em_ref[...],
                   preferred_element_type=f32)                        # (B*nx, 2ny)

    # Data consistency (noise_lvl=None) in the native interleaved k-space layout.
    out_il = k_dc_il + m_il * k0_ref[...].reshape(B * nx, 2 * ny)
    out_ref[...] = out_il.reshape(B, nx, 2 * ny)

    # Centered IFFT along ny: single fused matmul (de-interleave folded into the
    # DFT matrix). Columns [0:ny) = Re, [ny:2ny) = Im.
    r = jnp.dot(out_il, wy_ref[...], preferred_element_type=f32)      # (B*nx, 2ny)
    r3 = r.reshape(B, nx, 2 * ny)

    # Centered IFFT along nx: one block-complex matmul for all B images
    # (single weight load / drain; free dim B*ny keeps the MXU full).
    top = jnp.concatenate([r3[b, :, :ny] for b in range(B)], axis=1)  # (nx, B*ny)
    bot = jnp.concatenate([r3[b, :, ny:] for b in range(B)], axis=1)  # (nx, B*ny)
    rhs = jnp.concatenate([top, bot], axis=0)                         # (2nx, B*ny)
    x_all = jnp.dot(wx_ref[...], rhs, preferred_element_type=f32)     # (2nx, B*ny)
    for b in range(B):
        xres_ref[b] = x_all[:, b * ny:(b + 1) * ny]                   # [Re; Im] rows


# ----------------------------------------------------------------------------
# Tiling / VMEM heuristics
# ----------------------------------------------------------------------------
def _select_tiling(n, nx, ny):
    try:
        vmem_cap = int(pltpu.get_tpu_info().vmem_capacity_bytes)
    except Exception:
        vmem_cap = 64 * 1024 * 1024                      # conservative (v7x per-core)
    vmem_limit = min(int(0.70 * vmem_cap), 96 * 1024 * 1024)
    vmem_limit = max(vmem_limit, 32 * 1024 * 1024)

    # Single-buffered constants: P, E_m, Wy (2ny,2ny)/(ny,2ny)/(2ny,2ny), Wx (2nx,2nx).
    const_bytes = 4 * (2 * (2 * ny) * (2 * ny) + ny * 2 * ny + (2 * nx) * (2 * nx))
    # Per-image VMEM: double-buffered HBM-facing blocks (k, k0, mask, out, x_res
    # = 9*nx*ny f32 elements) plus transient in-kernel values (~15*nx*ny).
    per_image_bytes = 4 * nx * ny * (2 * 9 + 15)
    budget = vmem_limit - const_bytes - (6 << 20)

    # Cap B at n // 2 so grid >= 2 and v7x's second TensorCore gets work.
    b_cap = min(8, max(1, n // 2))
    batch = 1
    for cand in range(b_cap, 0, -1):
        if n % cand == 0 and cand * per_image_bytes <= budget:
            batch = cand
            break
    return batch, vmem_limit


# ----------------------------------------------------------------------------
# Wrapper
# ----------------------------------------------------------------------------
def data_consistency_in_kspace_k(k, k0, mask, noise_lvl=None):
    """Forward of DataConsistencyInKspace_K. Returns (x_res, out).

    k    : (n, 2, nx, ny)  float
    k0   : (n, nx, ny, 2)  float
    mask : (n, nx, ny, 1)  float
    """
    if noise_lvl is not None:
        # TODO(synk): the noise_lvl branch of data_consistency() is not implemented.
        raise NotImplementedError("DataConsistencyInKspace_K kernel supports noise_lvl=None only")

    n, two, nx, ny = k.shape
    assert two == 2
    assert k0.shape == (n, nx, ny, 2)
    assert mask.shape == (n, nx, ny, 1)
    assert nx % 8 == 0, "nx must be a multiple of 8 (TPU sublane tiling)"
    # TODO(synk): for full-rate (unmasked) stores, pad ny to a multiple of 128 and
    # trim outputs in the wrapper; left un-padded to keep arbitrary sizes working.

    f32 = jnp.float32
    k = k.astype(f32)
    # Free layout views (no HBM transposes / broadcasts):
    k0_il = jnp.reshape(k0.astype(f32), (n, nx, 2 * ny))   # lane-interleaved k0
    m_cmp = jnp.reshape(mask.astype(f32), (n, nx, ny))     # compact mask

    p_np, em_np, wy_np, wx_np = _dft_mats_np(nx, ny)
    p_il = jnp.asarray(p_np)
    e_m = jnp.asarray(em_np)
    wy_cat = jnp.asarray(wy_np)
    wx_blk = jnp.asarray(wx_np)

    B, vmem_limit = _select_tiling(n, nx, ny)
    grid = (n // B,)

    def _run(single_buffer_consts):
        def const_spec(shape):
            if single_buffer_consts:
                return pl.BlockSpec(shape, lambda g: (0, 0),
                                    pipeline_mode=pl.Buffered(1))
            return pl.BlockSpec(shape, lambda g: (0, 0))

        grid_spec = pltpu.PrefetchScalarGridSpec(
            num_scalar_prefetch=0,
            grid=grid,
            in_specs=[
                pl.BlockSpec((B, 2, nx, ny), lambda g: (g, 0, 0, 0)),   # k (planar)
                pl.BlockSpec((B, nx, 2 * ny), lambda g: (g, 0, 0)),     # k0 (interleaved)
                pl.BlockSpec((B, nx, ny), lambda g: (g, 0, 0)),         # mask (compact)
                const_spec((2 * ny, 2 * ny)),                           # interleave perm
                const_spec((ny, 2 * ny)),                               # mask expand
                const_spec((2 * ny, 2 * ny)),                           # fused Wy^T
                const_spec((2 * nx, 2 * nx)),                           # Wx block matrix
            ],
            out_specs=[
                pl.BlockSpec((B, nx, 2 * ny), lambda g: (g, 0, 0)),     # out (interleaved)
                pl.BlockSpec((B, 2 * nx, ny), lambda g: (g, 0, 0)),     # x_res ([Re; Im])
            ],
        )
        return pl.pallas_call(
            _dc_ifft_kernel,
            out_shape=(
                jax.ShapeDtypeStruct((n, nx, 2 * ny), f32),
                jax.ShapeDtypeStruct((n, 2 * nx, ny), f32),
            ),
            grid_spec=grid_spec,
            compiler_params=pltpu.CompilerParams(
                dimension_semantics=("parallel",),
                vmem_limit_bytes=int(vmem_limit)),
        )(k, k0_il, m_cmp, p_il, e_m, wy_cat, wx_blk)

    try:
        out_il, xres_st = _run(True)
    except Exception:
        # Fallback for Pallas builds that reject single-buffered constant specs;
        # the computation is identical, only constants become double-buffered.
        out_il, xres_st = _run(False)

    out = out_il.reshape(n, nx, ny, 2)       # free reshape: lanes already interleaved
    x_res = xres_st.reshape(n, 2, nx, ny)    # free reshape: [Re; Im] row-stacked
    return x_res, out


# ----------------------------------------------------------------------------
# Pure-JAX reference mirroring the PyTorch code.
# ----------------------------------------------------------------------------
def _reference(k, k0, mask):
    kp = jnp.transpose(k, (0, 2, 3, 1))                         # (n, nx, ny, 2)
    m = jnp.tile(mask, (1, 1, 1, 2))
    out = (1.0 - m) * kp + m * k0
    c = out[..., 0] + 1j * out[..., 1]                          # (n, nx, ny)
    c = jnp.fft.ifftshift(c, axes=(-2, -1))
    c = jnp.fft.ifft2(c, norm="ortho")
    c = jnp.fft.fftshift(c, axes=(-2, -1))
    x = jnp.stack([jnp.real(c), jnp.imag(c)], axis=-1)          # (n, nx, ny, 2)
    x_res = jnp.transpose(x, (0, 3, 1, 2))                      # (n, 2, nx, ny)
    return x_res, out


if __name__ == "__main__":
    key = jax.random.PRNGKey(0)
    n, nx, ny = 2, 16, 16
    k_key, k0_key, m_key = jax.random.split(key, 3)

    k = jax.random.normal(k_key, (n, 2, nx, ny), dtype=jnp.float32)
    k0 = jax.random.normal(k0_key, (n, nx, ny, 2), dtype=jnp.float32)
    mask = jax.random.bernoulli(m_key, 0.5, (n, nx, ny, 1)).astype(jnp.float32)

    x_res, out = data_consistency_in_kspace_k(k, k0, mask)
    jax.block_until_ready((x_res, out))

    x_ref, out_ref = _reference(k, k0, mask)
    np.testing.assert_allclose(np.asarray(out), np.asarray(out_ref), atol=1e-5, rtol=1e-5)
    np.testing.assert_allclose(np.asarray(x_res), np.asarray(x_ref), atol=1e-4, rtol=1e-4)

    print("KERNEL_OK")
</pallas_src>

<mosaic_0001>
module attributes {stable_mosaic.version = 11 : i64} {
  func.func @_dc_ifft_kernel(%arg0: i32, %arg1: memref<1x2x16x16xf32, #tpu.memory_space<vmem>>, %arg2: memref<1x16x32xf32, #tpu.memory_space<vmem>>, %arg3: memref<1x16x16xf32, #tpu.memory_space<vmem>>, %arg4: memref<32x32xf32, #tpu.memory_space<vmem>>, %arg5: memref<16x32xf32, #tpu.memory_space<vmem>>, %arg6: memref<32x32xf32, #tpu.memory_space<vmem>>, %arg7: memref<32x32xf32, #tpu.memory_space<vmem>>, %arg8: memref<1x16x32xf32, #tpu.memory_space<vmem>>, %arg9: memref<1x32x16xf32, #tpu.memory_space<vmem>>) attributes {dimension_semantics = [#tpu.dimension_semantics<parallel>], iteration_bounds = array<i64: 2>, scalar_prefetch = 0 : i64, scratch_operands = 0 : i64, tpu.core_type = #tpu.core_type<tc>, window_params = [{transform_indices = @transform_0, window_bounds = array<i64: 1, 2, 16, 16>}, {transform_indices = @transform_1, window_bounds = array<i64: 1, 16, 32>}, {transform_indices = @transform_2, window_bounds = array<i64: 1, 16, 16>}, {pipeline_mode = #tpu.pipeline_mode<synchronous>, transform_indices = @transform_3, window_bounds = array<i64: 32, 32>}, {pipeline_mode = #tpu.pipeline_mode<synchronous>, transform_indices = @transform_4, window_bounds = array<i64: 16, 32>}, {pipeline_mode = #tpu.pipeline_mode<synchronous>, transform_indices = @transform_5, window_bounds = array<i64: 32, 32>}, {pipeline_mode = #tpu.pipeline_mode<synchronous>, transform_indices = @transform_6, window_bounds = array<i64: 32, 32>}, {transform_indices = @transform_7, window_bounds = array<i64: 1, 16, 32>}, {transform_indices = @transform_8, window_bounds = array<i64: 1, 32, 16>}]} {
    %c0 = arith.constant 0 : index
    %c0_0 = arith.constant 0 : index
    %c0_1 = arith.constant 0 : index
    %c0_2 = arith.constant 0 : index
    %0 = vector.load %arg1[%c0, %c0_0, %c0_1, %c0_2] : memref<1x2x16x16xf32, #tpu.memory_space<vmem>>, vector<1x2x16x16xf32>
    %1 = vector.extract_strided_slice %0 {offsets = [0, 0, 0, 0], sizes = [1, 1, 16, 16], strides = [1, 1, 1, 1]} : vector<1x2x16x16xf32> to vector<1x1x16x16xf32>
    %2 = vector.shape_cast %1 : vector<1x1x16x16xf32> to vector<1x16x16xf32>
    %3 = vector.extract_strided_slice %0 {offsets = [0, 1, 0, 0], sizes = [1, 1, 16, 16], strides = [1, 1, 1, 1]} : vector<1x2x16x16xf32> to vector<1x1x16x16xf32>
    %4 = vector.shape_cast %3 : vector<1x1x16x16xf32> to vector<1x16x16xf32>
    %c0_3 = arith.constant 0 : index
    %c0_4 = arith.constant 0 : index
    %c0_5 = arith.constant 0 : index
    %5 = vector.load %arg3[%c0_3, %c0_4, %c0_5] : memref<1x16x16xf32, #tpu.memory_space<vmem>>, vector<1x16x16xf32>
    %cst = arith.constant 1.000000e+00 : f32
    %6 = vector.broadcast %cst : f32 to vector<1x16x16xf32>
    %7 = arith.subf %6, %5 : vector<1x16x16xf32>
    %8 = arith.mulf %7, %2 : vector<1x16x16xf32>
    %9 = arith.mulf %7, %4 : vector<1x16x16xf32>
    %10 = tpu.concatenate %8, %9 in 2 : vector<1x16x16xf32>, vector<1x16x16xf32> -> vector<1x16x32xf32>
    %11 = vector.shape_cast %10 : vector<1x16x32xf32> to vector<16x32xf32>
    %c0_6 = arith.constant 0 : index
    %c0_7 = arith.constant 0 : index
    %12 = vector.load %arg4[%c0_6, %c0_7] : memref<32x32xf32, #tpu.memory_space<vmem>>, vector<32x32xf32>
    %cst_8 = arith.constant dense<0.000000e+00> : vector<16x32xf32>
    %13 = tpu.matmul %11, %12, %cst_8 {dimension_numbers = #tpu.dot_dimension_numbers<[1], [0], [0], [1], [0, 0, 1, 1], [], []>} : vector<16x32xf32>, vector<32x32xf32>, vector<16x32xf32> -> vector<16x32xf32>
    %14 = vector.shape_cast %5 : vector<1x16x16xf32> to vector<16x16xf32>
    %c0_9 = arith.constant 0 : index
    %c0_10 = arith.constant 0 : index
    %15 = vector.load %arg5[%c0_9, %c0_10] : memref<16x32xf32, #tpu.memory_space<vmem>>, vector<16x32xf32>
    %cst_11 = arith.constant dense<0.000000e+00> : vector<16x32xf32>
    %16 = tpu.matmul %14, %15, %cst_11 {dimension_numbers = #tpu.dot_dimension_numbers<[1], [0], [0], [1], [0, 0, 1, 1], [], []>} : vector<16x16xf32>, vector<16x32xf32>, vector<16x32xf32> -> vector<16x32xf32>
    %c0_12 = arith.constant 0 : index
    %c0_13 = arith.constant 0 : index
    %c0_14 = arith.constant 0 : index
    %17 = vector.load %arg2[%c0_12, %c0_13, %c0_14] : memref<1x16x32xf32, #tpu.memory_space<vmem>>, vector<1x16x32xf32>
    %18 = vector.shape_cast %17 : vector<1x16x32xf32> to vector<16x32xf32>
    %19 = arith.mulf %16, %18 : vector<16x32xf32>
    %20 = arith.addf %13, %19 : vector<16x32xf32>
    %21 = vector.shape_cast %20 : vector<16x32xf32> to vector<1x16x32xf32>
    %c0_15 = arith.constant 0 : index
    %c0_16 = arith.constant 0 : index
    %c0_17 = arith.constant 0 : index
    %22 = vector.load %arg8[%c0_15, %c0_16, %c0_17] : memref<1x16x32xf32, #tpu.memory_space<vmem>>, vector<1x16x32xf32>
    tpu.vector_store %arg8[%c0_15, %c0_16, %c0_17], %21 {strides = array<i32>} : memref<1x16x32xf32, #tpu.memory_space<vmem>>, vector<1x16x32xf32>,
    %c0_18 = arith.constant 0 : index
    %c0_19 = arith.constant 0 : index
    %23 = vector.load %arg6[%c0_18, %c0_19] : memref<32x32xf32, #tpu.memory_space<vmem>>, vector<32x32xf32>
    %cst_20 = arith.constant dense<0.000000e+00> : vector<16x32xf32>
    %24 = tpu.matmul %20, %23, %cst_20 {dimension_numbers = #tpu.dot_dimension_numbers<[1], [0], [0], [1], [0, 0, 1, 1], [], []>} : vector<16x32xf32>, vector<32x32xf32>, vector<16x32xf32> -> vector<16x32xf32>
    %25 = vector.shape_cast %24 : vector<16x32xf32> to vector<1x16x32xf32>
    %26 = vector.extract_strided_slice %25 {offsets = [0, 0, 0], sizes = [1, 16, 16], strides = [1, 1, 1]} : vector<1x16x32xf32> to vector<1x16x16xf32>
    %27 = vector.shape_cast %26 : vector<1x16x16xf32> to vector<16x16xf32>
    %28 = vector.extract_strided_slice %25 {offsets = [0, 0, 16], sizes = [1, 16, 16], strides = [1, 1, 1]} : vector<1x16x32xf32> to vector<1x16x16xf32>
    %29 = vector.shape_cast %28 : vector<1x16x16xf32> to vector<16x16xf32>
    %30 = tpu.concatenate %27, %29 in 0 : vector<16x16xf32>, vector<16x16xf32> -> vector<32x16xf32>
    %c0_21 = arith.constant 0 : index
    %c0_22 = arith.constant 0 : index
    %31 = vector.load %arg7[%c0_21, %c0_22] : memref<32x32xf32, #tpu.memory_space<vmem>>, vector<32x32xf32>
    %cst_23 = arith.constant dense<0.000000e+00> : vector<32x16xf32>
    %32 = tpu.matmul %31, %30, %cst_23 {dimension_numbers = #tpu.dot_dimension_numbers<[1], [0], [0], [1], [0, 0, 1, 1], [], []>} : vector<32x32xf32>, vector<32x16xf32>, vector<32x16xf32> -> vector<32x16xf32>
    %c0_24 = arith.constant 0 : index
    %c0_25 = arith.constant 0 : index
    %c0_26 = arith.constant 0 : index
    %33 = vector.load %arg9[%c0_24, %c0_25, %c0_26] : memref<1x32x16xf32, #tpu.memory_space<vmem>>, vector<1x32x16xf32>
    %34 = vector.shape_cast %33 : vector<1x32x16xf32> to vector<32x16xf32>
    %35 = vector.shape_cast %32 : vector<32x16xf32> to vector<1x32x16xf32>
    tpu.vector_store %arg9[%c0_24, %c0_25, %c0_26], %35 {strides = array<i32>} : memref<1x32x16xf32, #tpu.memory_space<vmem>>, vector<1x32x16xf32>,
    return
  }
  func.func @transform_0(%arg0: i32) -> (i32, i32, i32, i32) {
    %c0_i32 = arith.constant 0 : i32
    %c0_i32_0 = arith.constant 0 : i32
    %c0_i32_1 = arith.constant 0 : i32
    %c0_i32_2 = arith.constant 0 : i32
    return %arg0, %c0_i32, %c0_i32_0, %c0_i32_1 : i32, i32, i32, i32
  }
  func.func @transform_1(%arg0: i32) -> (i32, i32, i32) {
    %c0_i32 = arith.constant 0 : i32
    %c0_i32_0 = arith.constant 0 : i32
    %c0_i32_1 = arith.constant 0 : i32
    return %arg0, %c0_i32, %c0_i32_0 : i32, i32, i32
  }
  func.func @transform_2(%arg0: i32) -> (i32, i32, i32) {
    %c0_i32 = arith.constant 0 : i32
    %c0_i32_0 = arith.constant 0 : i32
    %c0_i32_1 = arith.constant 0 : i32
    return %arg0, %c0_i32, %c0_i32_0 : i32, i32, i32
  }
  func.func @transform_3(%arg0: i32) -> (i32, i32) {
    %c0_i32 = arith.constant 0 : i32
    %c0_i32_0 = arith.constant 0 : i32
    %c0_i32_1 = arith.constant 0 : i32
    return %c0_i32, %c0_i32_0 : i32, i32
  }
  func.func @transform_4(%arg0: i32) -> (i32, i32) {
    %c0_i32 = arith.constant 0 : i32
    %c0_i32_0 = arith.constant 0 : i32
    %c0_i32_1 = arith.constant 0 : i32
    return %c0_i32, %c0_i32_0 : i32, i32
  }
  func.func @transform_5(%arg0: i32) -> (i32, i32) {
    %c0_i32 = arith.constant 0 : i32
    %c0_i32_0 = arith.constant 0 : i32
    %c0_i32_1 = arith.constant 0 : i32
    return %c0_i32, %c0_i32_0 : i32, i32
  }
  func.func @transform_6(%arg0: i32) -> (i32, i32) {
    %c0_i32 = arith.constant 0 : i32
    %c0_i32_0 = arith.constant 0 : i32
    %c0_i32_1 = arith.constant 0 : i32
    return %c0_i32, %c0_i32_0 : i32, i32
  }
  func.func @transform_7(%arg0: i32) -> (i32, i32, i32) {
    %c0_i32 = arith.constant 0 : i32
    %c0_i32_0 = arith.constant 0 : i32
    %c0_i32_1 = arith.constant 0 : i32
    return %arg0, %c0_i32, %c0_i32_0 : i32, i32, i32
  }
  func.func @transform_8(%arg0: i32) -> (i32, i32, i32) {
    %c0_i32 = arith.constant 0 : i32
    %c0_i32_0 = arith.constant 0 : i32
    %c0_i32_1 = arith.constant 0 : i32
    return %arg0, %c0_i32, %c0_i32_0 : i32, i32, i32
  }
}

module attributes {stable_mosaic.version = 11 : i64} {
  func.func @_dc_ifft_kernel(%arg0: i32, %arg1: memref<1x2x16x16xf32, #tpu.memory_space<vmem>>, %arg2: memref<1x16x32xf32, #tpu.memory_space<vmem>>, %arg3: memref<1x16x16xf32, #tpu.memory_space<vmem>>, %arg4: memref<32x32xf32, #tpu.memory_space<vmem>>, %arg5: memref<16x32xf32, #tpu.memory_space<vmem>>, %arg6: memref<32x32xf32, #tpu.memory_space<vmem>>, %arg7: memref<32x32xf32, #tpu.memory_space<vmem>>, %arg8: memref<1x16x32xf32, #tpu.memory_space<vmem>>, %arg9: memref<1x32x16xf32, #tpu.memory_space<vmem>>) attributes {dimension_semantics = [#tpu.dimension_semantics<parallel>], iteration_bounds = array<i64: 2>, scalar_prefetch = 0 : i64, scratch_operands = 0 : i64, tpu.core_type = #tpu.core_type<tc>, window_params = [{transform_indices = @transform_0, window_bounds = array<i64: 1, 2, 16, 16>}, {transform_indices = @transform_1, window_bounds = array<i64: 1, 16, 32>}, {transform_indices = @transform_2, window_bounds = array<i64: 1, 16, 16>}, {pipeline_mode = #tpu.pipeline_mode<synchronous>, transform_indices = @transform_3, window_bounds = array<i64: 32, 32>}, {pipeline_mode = #tpu.pipeline_mode<synchronous>, transform_indices = @transform_4, window_bounds = array<i64: 16, 32>}, {pipeline_mode = #tpu.pipeline_mode<synchronous>, transform_indices = @transform_5, window_bounds = array<i64: 32, 32>}, {pipeline_mode = #tpu.pipeline_mode<synchronous>, transform_indices = @transform_6, window_bounds = array<i64: 32, 32>}, {transform_indices = @transform_7, window_bounds = array<i64: 1, 16, 32>}, {transform_indices = @transform_8, window_bounds = array<i64: 1, 32, 16>}]} {
    %c0 = arith.constant 0 : index
    %c0_0 = arith.constant 0 : index
    %c0_1 = arith.constant 0 : index
    %c0_2 = arith.constant 0 : index
    %0 = vector.load %arg1[%c0, %c0_0, %c0_1, %c0_2] : memref<1x2x16x16xf32, #tpu.memory_space<vmem>>, vector<1x2x16x16xf32>
    %1 = vector.extract_strided_slice %0 {offsets = [0, 0, 0, 0], sizes = [1, 1, 16, 16], strides = [1, 1, 1, 1]} : vector<1x2x16x16xf32> to vector<1x1x16x16xf32>
    %2 = vector.shape_cast %1 : vector<1x1x16x16xf32> to vector<1x16x16xf32>
    %3 = vector.extract_strided_slice %0 {offsets = [0, 1, 0, 0], sizes = [1, 1, 16, 16], strides = [1, 1, 1, 1]} : vector<1x2x16x16xf32> to vector<1x1x16x16xf32>
    %4 = vector.shape_cast %3 : vector<1x1x16x16xf32> to vector<1x16x16xf32>
    %c0_3 = arith.constant 0 : index
    %c0_4 = arith.constant 0 : index
    %c0_5 = arith.constant 0 : index
    %5 = vector.load %arg3[%c0_3, %c0_4, %c0_5] : memref<1x16x16xf32, #tpu.memory_space<vmem>>, vector<1x16x16xf32>
    %cst = arith.constant 1.000000e+00 : f32
    %6 = vector.broadcast %cst : f32 to vector<1x16x16xf32>
    %7 = arith.subf %6, %5 : vector<1x16x16xf32>
    %8 = arith.mulf %7, %2 : vector<1x16x16xf32>
    %9 = arith.mulf %7, %4 : vector<1x16x16xf32>
    %10 = tpu.concatenate %8, %9 in 2 : vector<1x16x16xf32>, vector<1x16x16xf32> -> vector<1x16x32xf32>
    %11 = vector.shape_cast %10 : vector<1x16x32xf32> to vector<16x32xf32>
    %c0_6 = arith.constant 0 : index
    %c0_7 = arith.constant 0 : index
    %12 = vector.load %arg4[%c0_6, %c0_7] : memref<32x32xf32, #tpu.memory_space<vmem>>, vector<32x32xf32>
    %cst_8 = arith.constant dense<0.000000e+00> : vector<16x32xf32>
    %13 = tpu.matmul %11, %12, %cst_8 {dimension_numbers = #tpu.dot_dimension_numbers<[1], [0], [0], [1], [0, 0, 1, 1], [], []>} : vector<16x32xf32>, vector<32x32xf32>, vector<16x32xf32> -> vector<16x32xf32>
    %14 = vector.shape_cast %5 : vector<1x16x16xf32> to vector<16x16xf32>
    %c0_9 = arith.constant 0 : index
    %c0_10 = arith.constant 0 : index
    %15 = vector.load %arg5[%c0_9, %c0_10] : memref<16x32xf32, #tpu.memory_space<vmem>>, vector<16x32xf32>
    %cst_11 = arith.constant dense<0.000000e+00> : vector<16x32xf32>
    %16 = tpu.matmul %14, %15, %cst_11 {dimension_numbers = #tpu.dot_dimension_numbers<[1], [0], [0], [1], [0, 0, 1, 1], [], []>} : vector<16x16xf32>, vector<16x32xf32>, vector<16x32xf32> -> vector<16x32xf32>
    %c0_12 = arith.constant 0 : index
    %c0_13 = arith.constant 0 : index
    %c0_14 = arith.constant 0 : index
    %17 = vector.load %arg2[%c0_12, %c0_13, %c0_14] : memref<1x16x32xf32, #tpu.memory_space<vmem>>, vector<1x16x32xf32>
    %18 = vector.shape_cast %17 : vector<1x16x32xf32> to vector<16x32xf32>
    %19 = arith.mulf %16, %18 : vector<16x32xf32>
    %20 = arith.addf %13, %19 : vector<16x32xf32>
    %21 = vector.shape_cast %20 : vector<16x32xf32> to vector<1x16x32xf32>
    %c0_15 = arith.constant 0 : index
    %c0_16 = arith.constant 0 : index
    %c0_17 = arith.constant 0 : index
    %22 = vector.load %arg8[%c0_15, %c0_16, %c0_17] : memref<1x16x32xf32, #tpu.memory_space<vmem>>, vector<1x16x32xf32>
    tpu.vector_store %arg8[%c0_15, %c0_16, %c0_17], %21 {strides = array<i32>} : memref<1x16x32xf32, #tpu.memory_space<vmem>>, vector<1x16x32xf32>,
    %c0_18 = arith.constant 0 : index
    %c0_19 = arith.constant 0 : index
    %23 = vector.load %arg6[%c0_18, %c0_19] : memref<32x32xf32, #tpu.memory_space<vmem>>, vector<32x32xf32>
    %cst_20 = arith.constant dense<0.000000e+00> : vector<16x32xf32>
    %24 = tpu.matmul %20, %23, %cst_20 {dimension_numbers = #tpu.dot_dimension_numbers<[1], [0], [0], [1], [0, 0, 1, 1], [], []>} : vector<16x32xf32>, vector<32x32xf32>, vector<16x32xf32> -> vector<16x32xf32>
    %25 = vector.shape_cast %24 : vector<16x32xf32> to vector<1x16x32xf32>
    %26 = vector.extract_strided_slice %25 {offsets = [0, 0, 0], sizes = [1, 16, 16], strides = [1, 1, 1]} : vector<1x16x32xf32> to vector<1x16x16xf32>
    %27 = vector.shape_cast %26 : vector<1x16x16xf32> to vector<16x16xf32>
    %28 = vector.extract_strided_slice %25 {offsets = [0, 0, 16], sizes = [1, 16, 16], strides = [1, 1, 1]} : vector<1x16x32xf32> to vector<1x16x16xf32>
    %29 = vector.shape_cast %28 : vector<1x16x16xf32> to vector<16x16xf32>
    %30 = tpu.concatenate %27, %29 in 0 : vector<16x16xf32>, vector<16x16xf32> -> vector<32x16xf32>
    %c0_21 = arith.constant 0 : index
    %c0_22 = arith.constant 0 : index
    %31 = vector.load %arg7[%c0_21, %c0_22] : memref<32x32xf32, #tpu.memory_space<vmem>>, vector<32x32xf32>
    %cst_23 = arith.constant dense<0.000000e+00> : vector<32x16xf32>
    %32 = tpu.matmul %31, %30, %cst_23 {dimension_numbers = #tpu.dot_dimension_numbers<[1], [0], [0], [1], [0, 0, 1, 1], [], []>} : vector<32x32xf32>, vector<32x16xf32>, vector<32x16xf32> -> vector<32x16xf32>
    %c0_24 = arith.constant 0 : index
    %c0_25 = arith.constant 0 : index
    %c0_26 = arith.constant 0 : index
    %33 = vector.load %arg9[%c0_24, %c0_25, %c0_26] : memref<1x32x16xf32, #tpu.memory_space<vmem>>, vector<1x32x16xf32>
    %34 = vector.shape_cast %33 : vector<1x32x16xf32> to vector<32x16xf32>
    %35 = vector.shape_cast %32 : vector<32x16xf32> to vector<1x32x16xf32>
    tpu.vector_store %arg9[%c0_24, %c0_25, %c0_26], %35 {strides = array<i32>} : memref<1x32x16xf32, #tpu.memory_space<vmem>>, vector<1x32x16xf32>,
    return
  }
  func.func @transform_0(%arg0: i32) -> (i32, i32, i32, i32) {
    %c0_i32 = arith.constant 0 : i32
    %c0_i32_0 = arith.constant 0 : i32
    %c0_i32_1 = arith.constant 0 : i32
    %c0_i32_2 = arith.constant 0 : i32
    return %arg0, %c0_i32, %c0_i32_0, %c0_i32_1 : i32, i32, i32, i32
  }
  func.func @transform_1(%arg0: i32) -> (i32, i32, i32) {
    %c0_i32 = arith.constant 0 : i32
    %c0_i32_0 = arith.constant 0 : i32
    %c0_i32_1 = arith.constant 0 : i32
    return %arg0, %c0_i32, %c0_i32_0 : i32, i32, i32
  }
  func.func @transform_2(%arg0: i32) -> (i32, i32, i32) {
    %c0_i32 = arith.constant 0 : i32
    %c0_i32_0 = arith.constant 0 : i32
    %c0_i32_1 = arith.constant 0 : i32
    return %arg0, %c0_i32, %c0_i32_0 : i32, i32, i32
  }
  func.func @transform_3(%arg0: i32) -> (i32, i32) {
    %c0_i32 = arith.constant 0 : i32
    %c0_i32_0 = arith.constant 0 : i32
    %c0_i32_1 = arith.constant 0 : i32
    return %c0_i32, %c0_i32_0 : i32, i32
  }
  func.func @transform_4(%arg0: i32) -> (i32, i32) {
    %c0_i32 = arith.constant 0 : i32
    %c0_i32_0 = arith.constant 0 : i32
    %c0_i32_1 = arith.constant 0 : i32
    return %c0_i32, %c0_i32_0 : i32, i32
  }
  func.func @transform_5(%arg0: i32) -> (i32, i32) {
    %c0_i32 = arith.constant 0 : i32
    %c0_i32_0 = arith.constant 0 : i32
    %c0_i32_1 = arith.constant 0 : i32
    return %c0_i32, %c0_i32_0 : i32, i32
  }
  func.func @transform_6(%arg0: i32) -> (i32, i32) {
    %c0_i32 = arith.constant 0 : i32
    %c0_i32_0 = arith.constant 0 : i32
    %c0_i32_1 = arith.constant 0 : i32
    return %c0_i32, %c0_i32_0 : i32, i32
  }
  func.func @transform_7(%arg0: i32) -> (i32, i32, i32) {
    %c0_i32 = arith.constant 0 : i32
    %c0_i32_0 = arith.constant 0 : i32
    %c0_i32_1 = arith.constant 0 : i32
    return %arg0, %c0_i32, %c0_i32_0 : i32, i32, i32
  }
  func.func @transform_8(%arg0: i32) -> (i32, i32, i32) {
    %c0_i32 = arith.constant 0 : i32
    %c0_i32_0 = arith.constant 0 : i32
    %c0_i32_1 = arith.constant 0 : i32
    return %arg0, %c0_i32, %c0_i32_0 : i32, i32, i32
  }
}

</mosaic_0001>

<bundles_post_ra>
// kernel: tpu_custom_call.1
= control target key start
LH: loop header
LB: loop body
LE: loop exit
PB: predicated region body
PF: predicated region fallthrough
CT: control target
= control target key end

     0   :  { %s1659_s0 = inlined_call_operand.hbm [shape: f32[2,2,16,16], index: 0, kind: input, shape index: {}]   ;;  %s1660_s1 = inlined_call_operand.hbm [shape: f32[2,16,32], index: 1, kind: input, shape index: {}]   ;;  %s1661_s2 = inlined_call_operand.hbm [shape: f32[2,16,16], index: 2, kind: input, shape index: {}]   ;;  %s1662_s3 = inlined_call_operand.hbm [shape: f32[32,32], index: 3, kind: input, shape index: {}]   ;;  %s1663_s4 = inlined_call_operand.hbm [shape: f32[16,32], index: 4, kind: input, shape index: {}]   ;;  %s1664_s5 = inlined_call_operand.hbm [shape: f32[32,32], index: 5, kind: input, shape index: {}]   ;;  %s1665_s6 = inlined_call_operand.hbm [shape: f32[32,32], index: 6, kind: input, shape index: {}]   ;;  %s1666_s7 = inlined_call_operand.hbm [shape: f32[2,16,32], index: 7, kind: output, shape index: {0}]   ;;  %s1667_s8 = inlined_call_operand.vmem [shape: f32[2,32,16], index: 8, kind: output, shape index: {1}]  }
   0x1   :  { %1678 = sst [smem:[#allocation25_spill]] %s1660_s1 }
   0x2   :  { %1679 = sst [smem:[#allocation26_spill]] %s1662_s3 }
   0x3   :  { %1680 = sst [smem:[#allocation27_spill]] %s1663_s4 }
   0x4   :  { %1681 = sst [smem:[#allocation28_spill]] %s1664_s5 }
   0x5   :  { %1682 = sst [smem:[#allocation29_spill]] %s1667_s8 }
   0x6   :  { %14 = vsyncpa [#allocation3], 0 }
   0x7   :  { %16 = vsyncpa [#allocation3 + $0x1], 0 }
   0x8   :  { %17 = vsyncpa [#allocation6], 0 }
   0x9   :  { %19 = vsyncpa [#allocation6 + $0x1], 0 }
   0xa   :  { %20 = vsyncpa [#allocation9], 0 }
   0xb   :  { %21 = vsyncpa [#allocation12], 0 }
   0xc   :  { %22 = vsyncpa [#allocation4], 0 }
   0xd   :  { %24 = vsyncpa [#allocation4 + $0x1], 0  ;;  %s1377_s27 = smov 0   ;;  %s1379_s28 = smov 0  }
   0xe   :  { %s1381_s29 = smov 0   ;;  %s1383_s30 = smov 0  }
   0xf LB: > { %1683 = sst [smem:[#allocation20_spill]] %s1308_s27  ;;  %s1398_s9 = sadd.s32 4294967295, %s1320_s30   ;;  %s1320_s30 = sphi %s1383_s30, %s1708_s30   ;;  %s1316_s29 = sphi %s1381_s29, %s1710_s29   ;;  %s1312_s28 = sphi %s1379_s28, %s1712_s28   ;;  %s1308_s27 = sphi %s1377_s27, %s1711_s27  }
  0x10   : > { %1684 = sst [smem:[#allocation21_spill]] %s1316_s29  ;;  %s873_s10 = sadd.s32 4294967294, %s1320_s30  }
  0x11   : > { %p50_p0 = scmp.ne.s32.totalorder %s1312_s28, %s1308_s27  ;;  %p1675_p1 = scmp.eq.s32.totalorder %s1398_s9, 0 }
  0x12   : > { %p210_p2 = scmp.eq.s32.totalorder %s1398_s9, 1  ;;  %p216_p3 = scmp.eq.s32.totalorder %s873_s10, 1 }
  0x13   : > { %p1407_p4 = por %p1675_p1, %p50_p0  ;;  %p874_p5 = scmp.ge.s32.totalorder %s1320_s30, 1 }
  0x14   : > { %p1412_p6 = por %p216_p3, %p50_p0  ;;  %p249_p7 = scmp.lt.s32.totalorder %s1320_s30, 3 }
  0x15   : > { %s1688_s3 = sld [smem:[#allocation26_spill]]  ;;  %s1322_s17 = smov [#allocation8]  }
  0x16   : > { %s1686_s12 = scalar_select %p1412_p6, 1, 0 }
  0x17   : > { %p1420_p8 = pnand %p874_p5, %p249_p7  ;;  %s262_s18 = sshll.u32 %s1322_s17, 4  ;;  %s263_s18 = int_to_ptr.vmem [resolvable:$true] %s262_s18 }
  0x18   : > { %1687 = sst [smem:[#allocation22_spill]] %s1686_s12  ;;  %s1668_s23 = smov 128  }
  0x19   : > { %p948_p9 = pneg %p1420_p8  ;;  %s1691_s5 = sld [smem:[#allocation28_spill]] }
  0x1a   : > { %s1670_s24 = smov 8   ;;  %s1325_s25 = smov [#allocation11]  }
  0x1b   : > { %s260_s15 = sshll.u32 %s1688_s3, 4  ;;  %p1428_p10 = pnand %p948_p9, %p1675_p1  ;;  %s261_s15 = int_to_ptr.hbm [resolvable:$true] %s260_s15 }
  0x1c   : > { %s290_s26 = sshll.u32 %s1325_s25, 4  ;;  %s1447_s10 = sadd.s32 1, %s1320_s30   ;;  %s291_s26 = int_to_ptr.vmem [resolvable:$true] %s290_s26 }
  0x1d   : > { %951 = dma.hbm_to_vmem [thread:$0]  (!%p1428_p10), %s261_s15, 512, %s263_s18, [#allocation9], %s1668_s23, %s1668_s23, %s1670_s24  }
  0x1e   : > { %1692 = sst [smem:[#allocation23_spill]] %s1447_s10  ;;  %s37_s13 = sadd.s32 1, %s1316_s29 }
  0x1f   : > { %s288_s22 = sshll.u32 %s1691_s5, 4  ;;  %s34_s14 = ssub.s32 %s1320_s30, %s1447_s10  ;;  %s289_s22 = int_to_ptr.hbm [resolvable:$true] %s288_s22 }
  0x20   : > { %957 = dma.hbm_to_vmem [thread:$0]  (!%p1428_p10), %s289_s22, 512, %s291_s26, [#allocation12], %s1668_s23, %s1668_s23, %s1670_s24  }
  0x21   : > { %p44_p12 = scmp.ne.s32.totalorder %s1316_s29, %s1312_s28  ;;  %p35_p13 = scmp.eq.s32.totalorder %s34_s14, 0 }
  0x22   : > { %p45_p0 = scmp.eq.s32.totalorder %s1320_s30, 0  ;;  %p979_p5 = scmp.lt.s32.totalorder %s1320_s30, 2 }
  0x23   : > { %p1457_p3 = por %p210_p2, %p44_p12  ;;  %s1466_s18 = sand.u32 1, %s1316_s29  }
  0x24   : > { %s1463_s17 = scalar_select %p35_p13, %s1316_s29, %s37_s13  }
  0x25   : > { %p46_p7 = por %p45_p0, %p44_p12  ;;  %s340_s20 = sand.u32 1, %s1320_s30  }
  0x26   : > { %1694 = sst [smem:[#allocation24_spill]] %s1463_s17  ;;  %s883_s21 = sshll.u32 %s1466_s18, 4 }
  0x27   : > { %p1470_p9 = pnand %p979_p5, %p46_p7  ;;  %s916_s25 = sshll.u32 %s1320_s30, 4 }
  0x28   : > { %s1696_s1 = sld [smem:[#allocation25_spill]]  ;;  %s344_s13 = scalar_lea.vmem [#allocation5], %s883_s21 }
  0x29   : > { %s352_s3 = sshll.u32 %s344_s13, 4  ;;  %s1478_s5 = scalar_lea.sflag [#allocation6], %s340_s20  ;;  %s353_s3 = int_to_ptr.vmem [resolvable:$true] %s352_s3 }
  0x2a   : > { %p1096_p12 = pneg %p1470_p9 }
  0x2e   : > { %s349_s23 = scalar_lea.hbm %s1696_s1, %s916_s25 }
  0x2f   : > { %s350_s24 = sshll.u32 %s349_s23, 4  ;;  %s1099_s23 = scalar_lea.hbm %s1696_s1, 32  ;;  %s351_s24 = int_to_ptr.hbm [resolvable:$true] %s350_s24 }
  0x30   : > { %s1092_s17 = sshra.s32 %s351_s24, 4  ;;  %s1093_s17 = int_to_ptr.hbm [resolvable:$true] %s1092_s17 }
  0x31   : > { %s1094_s29 = scalar_lea.hbm %s1093_s17, 16  ;;  %p1100_p5 = scmp.lt.s32.totalorder %s1093_s17, %s1696_s1 }
  0x32   : > { %p1095_p2 = scmp.ne.s32.totalorder %s1093_s17, %s1094_s29  ;;  %p1101_p7 = scmp.lt.s32.totalorder %s1099_s23, %s1094_s29 }
  0x34   : > { %p1097_p13 = pnand %p1096_p12, %p1095_p2  ;;  %p1102_p11 = por %p1101_p7, %p1100_p5 }
  0x36   : > { %p1098_p0 = pneg %p1097_p13 }
  0x38   : > { %p1103_p1 = pnand %p1102_p11, %p1098_p0 }
  0x3a   : > { %1106 = shalt.err (!%p1103_p1)
}
  0x3b   : > { %s1697_s20 = smov 8   ;;  %s1698_s12 = smov 128  }
  0x3c   : > { %967 = dma.hbm_to_vmem [thread:$0]  (!%p1470_p9), %s351_s24, 256, %s353_s3, %s1478_s5, %s1698_s12, %s1698_s12, %s1697_s20  }
  0x3d   : > { %s371_s10 = scalar_lea.hbm %s1661_s2, %s916_s25  ;;  %s366_s14 = scalar_lea.vmem [#allocation7], %s883_s21 }
  0x3e   : > { %s372_s26 = sshll.u32 %s371_s10, 4  ;;  %s374_s29 = sshll.u32 %s366_s14, 4  ;;  %s1500_s26 = int_to_ptr.hbm [resolvable:$true] %s372_s26  ;;  %s1502_s29 = int_to_ptr.vmem [resolvable:$true] %s374_s29 }
  0x3f   : > { %s1699_s4 = sld [smem:[#allocation27_spill]]  ;;  %s1326_s3 = smov [#allocation10]  }
  0x40   : > { %s276_s24 = sshll.u32 %s1326_s3, 4  ;;  %s302_s21 = sshll.u32 %s1665_s6, 4  ;;  %s277_s24 = int_to_ptr.vmem [resolvable:$true] %s276_s24  ;;  %s303_s21 = int_to_ptr.hbm [resolvable:$true] %s302_s21 }
  0x41   : > { %s1327_s25 = smov [#allocation13]   ;;  %s880_s14 = sshll.u32 %s1466_s18, 5 }
  0x42   : > { %s304_s10 = sshll.u32 %s1327_s25, 4  ;;  %s915_s17 = sshll.u32 %s1320_s30, 5  ;;  %s305_s10 = int_to_ptr.vmem [resolvable:$true] %s304_s10 }
  0x43   : > { %960 = dma.hbm_to_vmem [thread:$0]  (!%p1428_p10), %s303_s21, 512, %s305_s10, [#allocation12], %s1698_s12, %s1698_s12, %s1697_s20  }
  0x44   : > { %s327_s8 = scalar_lea.hbm %s1659_s0, %s915_s17  ;;  %s322_s27 = scalar_lea.vmem [#allocation2], %s880_s14 }
  0x45   : > { %s274_s13 = sshll.u32 %s1699_s4, 4  ;;  %s330_s1 = sshll.u32 %s322_s27, 4  ;;  %s275_s13 = int_to_ptr.hbm [resolvable:$true] %s274_s13  ;;  %s331_s1 = int_to_ptr.vmem [resolvable:$true] %s330_s1 }
  0x46   : > { %954 = dma.hbm_to_vmem [thread:$0]  (!%p1428_p10), %s275_s13, 256, %s277_s24, [#allocation9], %s1698_s12, %s1698_s12, %s1697_s20  }
  0x47   : > { %s328_s4 = sshll.u32 %s327_s8, 4  ;;  %s319_s13 = scalar_lea.sflag [#allocation3], %s1466_s18  ;;  %s329_s4 = int_to_ptr.hbm [resolvable:$true] %s328_s4 }
  0x48   : > { %s1182_s24 = sshra.s32 %s329_s4, 4  ;;  %s1189_s10 = scalar_lea.hbm %s1659_s0, 64  ;;  %s1183_s24 = int_to_ptr.hbm [resolvable:$true] %s1182_s24 }
  0x49   : > { %s1184_s25 = scalar_lea.hbm %s1183_s24, 32  ;;  %p1190_p10 = scmp.lt.s32.totalorder %s1183_s24, %s1659_s0 }
  0x4a   : > { %p1185_p1 = scmp.ne.s32.totalorder %s1183_s24, %s1184_s25  ;;  %p1191_p13 = scmp.lt.s32.totalorder %s1189_s10, %s1184_s25 }
  0x4c   : > { %p1187_p11 = pnand %p1185_p1, %p1096_p12  ;;  %p1192_p0 = por %p1191_p13, %p1190_p10 }
  0x4e   : > { %p1188_p2 = pneg %p1187_p11 }
  0x50   : > { %p1193_p5 = pnand %p1192_p0, %p1188_p2 }
  0x52   : > { %1196 = shalt.err (!%p1193_p5)
}
  0x53   : > { %964 = dma.hbm_to_vmem [thread:$0]  (!%p1470_p9), %s329_s4, 512, %s331_s1, %s319_s13, %s1698_s12, %s1698_s12, %s1697_s20  }
  0x54   : > { %s1212_s18 = sshra.s32 %s1500_s26, 4  ;;  %s1219_s27 = scalar_lea.hbm %s1661_s2, 32  ;;  %s1213_s18 = int_to_ptr.hbm [resolvable:$true] %s1212_s18 }
  0x55   : > { %s1214_s14 = scalar_lea.hbm %s1213_s18, 16  ;;  %p1220_p2 = scmp.lt.s32.totalorder %s1213_s18, %s1661_s2 }
  0x56   : > { %p1215_p7 = scmp.ne.s32.totalorder %s1213_s18, %s1214_s14  ;;  %p1221_p10 = scmp.lt.s32.totalorder %s1219_s27, %s1214_s14 }
  0x58   : > { %p1217_p1 = pnand %p1215_p7, %p1096_p12  ;;  %p1222_p13 = por %p1221_p10, %p1220_p2 }
  0x5a   : > { %p1218_p11 = pneg %p1217_p1 }
  0x5c   : > { %p1223_p0 = pnand %p1222_p13, %p1218_p11 }
  0x5e   : > { %1226 = shalt.err (!%p1223_p0)
}
  0x5f   : > { %970 = dma.hbm_to_vmem [thread:$0]  (!%p1470_p9), %s1500_s26, 256, %s1502_s29, %s1478_s5, %s1698_s12, %s1698_s12, %s1697_s20  }
  0x60   : > { %386 = sbr.rel (%p1420_p8) target bundleno = 776 (0x308), region = 48  ;;  %s1561_s1 = sand.u32 (!%p1420_p8), 1, %s1312_s28  }
  0x61   : > { %s890_s4 = sshll.u32 (!%p1420_p8), %s1561_s1, 5  ;;  %s389_s13 = scalar_lea.sflag (!%p1420_p8), [#allocation3], %s1561_s1 }
  0x62   : > { %s1565_s19 = scalar_lea.vmem (!%p1420_p8), [#allocation2], %s890_s4 }
  0x65   : > { %1287 = dma.done.wait (%p1407_p4), %s389_s13, 512  }
  0x66   : > { %1289 = vsyncadd (%p1407_p4), %s389_s13, 4294966784  ;;  %s398_s5 = sand.u32 1, %s1398_s9   ;;  %s1573_s12 = sshll.u32 %s1561_s1, 4 }
  0x67   : > { %s399_s16 = scalar_lea.sflag [#allocation6], %s398_s5  ;;  %s402_s22 = scalar_lea.vmem [#allocation5], %s1573_s12 }
  0x68   : > { %1291 = dma.done.wait (%p1407_p4), %s399_s16, 512  }
  0x69   : > { %1293 = vsyncadd (%p1407_p4), %s399_s16, 4294966784  ;;  %s412_s20 = scalar_lea.vmem [#allocation7], %s1573_s12  ;;  %p1700_p8 = scmp.eq.s32.totalorder %s1398_s9, 0 }
  0x6b   : > { %1295 = dma.done.wait (%p1700_p8), [#allocation9], 768   ;;  %p1701_p9 = pmov %p1700_p8 }
  0x6c   : > { %p1702_p12 = pmov %p1700_p8 }
  0x6d   : > { %1297 = vsyncadd (%p1701_p9), [#allocation9], 4294966528 }
  0x6e   : > { %1299 = dma.done.wait (%p1702_p12), [#allocation12], 1024   ;;  %p1703_p5 = pmov %p1700_p8 }
  0x6f   : > { %v488_v0 = vld [vmem:[%s1565_s19 + $0x10] sm:$0xff]  ;;  %v491_v3 = vld [vmem:[%s412_s20 + $0x8] sm:$0xff]  ;;  %v513_v7 = vld [vmem:[#allocation10] sm:$0xff]  ;;  %vm506_vm0 = vcmask 130048   ;;  %s1328_s11 = smov 16   ;;  %vm548_vm1 = vcmask 261120  }
  0x70   : > { %1301 = vsyncadd (%p1703_p5), [#allocation12], 4294966272  ;;  %v490_v1 = vld [vmem:[%s412_s20] sm:$0xff]  ;;  %v512_v4 = vld [vmem:[#allocation8 + $0x18] sm:$0xff]  ;;  %v493_v10 = vsub.f32 1.0, %v491_v3  ;;  %s1604_s26 = scalar_lea.vmem [#allocation14], %s1573_s12 }
  0x71   : > { %v492_v2 = vsub.f32 1.0, %v490_v1  ;;  %567 = vmatpush.msra.mxu1 %v512_v4  ;;  %v514_v5 = vld [vmem:[#allocation10 + $0x8] sm:$0xff]  ;;  %v511_v6 = vld [vmem:[#allocation8 + $0x10] sm:$0xff]  ;;  %v489_v11 = vld [vmem:[%s1565_s19 + $0x18] sm:$0xff]  ;;  %s1329_s29 = smov 112   ;;  %s688_s21 = sshll.u32 %s1604_s26, 4  ;;  %s689_s21 = int_to_ptr.vmem [resolvable:$true] %s688_s21 }
  0x72   : > { %535 = vmatpush.msra.mxu0 %v514_v5  ;;  %v510_v9 = vld [vmem:[#allocation8 + $0x8] sm:$0xff]  ;;  %v497_v12 = vmul.f32 %v493_v10, %v489_v11  ;;  %v509_v13 = vld [vmem:[#allocation8] sm:$0xff]  ;;  %v581_v24 = vld [vmem:[#allocation11 + $0x8] sm:$0xff]  ;;  %s919_s10 = sshll.u32 %s1398_s9, 4  ;;  %s671_s3 = scalar_lea.sflag [#allocation4], %s1561_s1 }
  0x73   : > { %v496_v8 = vmul.f32 %v492_v2, %v488_v0  ;;  %568 = vmatpush.msra.mxu1 %v511_v6  ;;  %v583_v14 = vld [vmem:[#allocation11 + $0x18] sm:$0xff]  ;;  %v582_v15 = vld [vmem:[#allocation11 + $0x10] sm:$0xff]  ;;  %v580_v25 = vld [vmem:[#allocation11] sm:$0xff]  ;;  %s687_s18 = scalar_lea.hbm %s1666_s7, %s919_s10  ;;  %s1262_s4 = scalar_lea.hbm %s1666_s7, 32 }
  0x74   : > { %536 = vmatpush.msra.mxu0 %v513_v7  ;;  %602 = vmatpush.msra.mxu2 %v583_v14  ;;  %v486_v16 = vld [vmem:[%s1565_s19] sm:$0xff]  ;;  %v487_v20 = vld [vmem:[%s1565_s19 + $0x8] sm:$0xff]  ;;  %v622_v42 = vld [vmem:[#allocation13 + $0x8] sm:$0xff]  ;;  %s690_s14 = sshll.u32 %s687_s18, 4  ;;  %s691_s14 = int_to_ptr.hbm [resolvable:$true] %s690_s14 }
  0x75   : > { %500 = vrot.lane.b32.xlu0 %v496_v8, %s1328_s11  ;;  %569 = vmatpush.msra.mxu1 %v510_v9  ;;  %v494_v17 = vmul.f32 %v492_v2, %v486_v16  ;;  %v495_v21 = vmul.f32 %v493_v10, %v487_v20  ;;  %v544_v27 = vld [vmem:[%s402_s22] sm:$0xff]  ;;  %v545_v32 = vld [vmem:[%s402_s22 + $0x8] sm:$0xff]  ;;  %s1256_s8 = sshra.s32 %s691_s14, 4  ;;  %s1257_s8 = int_to_ptr.hbm [resolvable:$true] %s1256_s8 }
  0x76   : > { %900 = vmatmul.msk.f32.vlgmr.msra.gmra.mxu0 %vm506_vm0, %v490_v1  ;;  %603 = vmatpush.msra.mxu2 %v582_v15  ;;  %v621_v43 = vld [vmem:[#allocation13] sm:$0xff]  ;;  %v623_v44 = vld [vmem:[#allocation13 + $0x10] sm:$0xff]  ;;  %v624_v45 = vld [vmem:[#allocation13 + $0x18] sm:$0xff]  ;;  %s1258_s27 = scalar_lea.hbm %s1257_s8, 16  ;;  %p1263_p11 = scmp.lt.s32.totalorder %s1257_s8, %s1666_s7 }
  0x77   : > { %570 = vmatpush.msra.mxu1 %v509_v13  ;;  %p1259_p4 = scmp.ne.s32.totalorder %s1257_s8, %s1258_s27  ;;  %p1264_p2 = scmp.lt.s32.totalorder %s1262_s4, %s1258_s27 }
  0x78   : > { %604 = vmatpush.msra.mxu2 %v581_v24 }
  0x79   : > { %p1260_p7 = pnand %p1259_p4, %p1457_p3  ;;  %p1265_p10 = por %p1264_p2, %p1263_p11 }
  0x7a   : > { %605 = vmatpush.msra.mxu2 %v580_v25 }
  0x7b   : > { %p1261_p1 = pneg %p1260_p7 }
  0x7d   : > { %502 = vrot.lane.b32.xlu0 %v497_v12, %s1328_s11  ;;  %p1266_p13 = pnand %p1265_p10, %p1261_p1 }
  0x7e   : > { %901 = vmatmul.msk.f32.gmra.mxu0 %vm506_vm0, %v491_v3 }
  0xe7   : > { %v501_v18 = vpop.permute.xlu0 %500 }
  0xe8   : > { %v507_v19 = vsel %vm506_vm0, %v494_v17, %v501_v18 }
  0xe9   : > { %902 = vmatmul.msk.f32.vlgmr.msra.gmra.mxu1 %vm548_vm1, %v507_v19 }
  0xef   : > { %v503_v22 = vpop.permute.xlu0 %502 }
  0xf0   : > { %v508_v23 = vsel %vm506_vm0, %v495_v21, %v503_v22 }
  0xf1   : > { %903 = vmatmul.msk.f32.gmra.mxu1 %vm548_vm1, %v508_v23 }
  0xf3   : > { %v538_v26 = vpop.f32.mrf.mxu0 }
  0xf4   : > { %v546_v28 = vmul.f32 %v544_v27, %v538_v26 }
  0xfb   : > { %v541_v31 = vpop.f32.mrf.mxu0 }
  0xfc   : > { %v547_v33 = vmul.f32 %v545_v32, %v541_v31 }
 0x166   : > { %v572_v29 = vpop.f32.mrf.mxu1 }
 0x167   : > { %v573_v30 = vadd.f32 %v572_v29, %v546_v28 }
 0x169   : > { %578 = vst.msk [vmem:[%s1604_s26] sm:$0xff] %vm548_vm1, %v573_v30  ;;  %904 = vmatmul.msk.f32.vlgmr.msra.gmra.mxu2 %vm548_vm1, %v573_v30 }
 0x16e   : > { %v575_v34 = vpop.f32.mrf.mxu1 }
 0x16f   : > { %v576_v35 = vadd.f32 %v575_v34, %v547_v33 }
 0x171   : > { %579 = vst.msk [vmem:[%s1604_s26 + $0x8] sm:$0xff] %vm548_vm1, %v576_v35  ;;  %905 = vmatmul.msk.f32.gmra.mxu2 %vm548_vm1, %v576_v35 }
 0x1ec   : > { %v607_v36 = vpop.f32.mrf.mxu2 }
 0x1f4   : > { %v610_v37 = vpop.f32.mrf.mxu2 }
 0x1f5   : > { %v1027_v38 = vpack.i.bf16 %v607_v36, %v610_v37 }
 0x1f7   : > { %1028 = vrot.lane.b32.xlu1 %v1027_v38, %s1329_s29 }
 0x269   : > { %v1029_v39 = vpop.permute.xlu1 %1028 }
 0x26a   : > { %v1030_v40 = vunpack.i.l.bf16 %v1029_v39  ;;  %v1031_v41 = vunpack.i.h.bf16 %v1029_v39 }
 0x26c   : > { %649 = vmatpush.msrb.mxu0 %v1030_v40  ;;  %920 = vmatpush.msra.mxu3 %v1030_v40 }
 0x26e   : > { %650 = vmatpush.msrb.mxu0 %v1031_v41  ;;  %921 = vmatpush.msra.mxu3 %v1031_v41 }
 0x270   : > { %651 = vmatpush.msrb.mxu0 %v610_v37  ;;  %922 = vmatpush.msra.mxu3 %v610_v37 }
 0x272   : > { %652 = vmatpush.msrb.mxu0 %v607_v36  ;;  %923 = vmatpush.msra.mxu3 %v607_v36 }
 0x273   : > { %907 = vmatmul.msk.f32.vlgmr.msra.gmra.mxu3 %vm548_vm1, %v622_v42  ;;  %906 = vmatmul.msk.f32.vlgmr.msrb.gmra.mxu0 %vm548_vm1, %v621_v43 }
 0x27b   : > { %908 = vmatmul.msk.f32.gmra.mxu3 %vm548_vm1, %v623_v44 }
 0x283   : > { %909 = vmatmul.msk.f32.gmra.mxu3 %vm548_vm1, %v624_v45 }
 0x284   : > { %1269 = shalt.err (!%p1266_p13)
}
 0x285   : > { %s1330_s1 = smov 128   ;;  %s1331_s5 = smov 8  }
 0x286   : > { %946 = dma.vmem_to_hbm [thread:$0]  (%p1457_p3), %s689_s21, 256, %s691_s14, %s671_s3, %s1330_s1, %s1330_s1, %s1331_s5  }
 0x287   : > { %p481_p0 = scmp.lt.s32.totalorder %s1398_s9, 1  ;;  %s1704_s20 = sld [smem:[#allocation29_spill]] }
 0x289   : > { %s1714_s9 = smov (!%p481_p0, %s1398_s9), 1 }
 0x28a   : > { %s918_s12 = sshll.u32 %s1714_s9, 5 }
 0x28d   : > { %s485_s11 = scalar_lea.vmem %s1704_s20, %s918_s12 }
 0x2f0   : > { %v654_v46 = vpop.f32.mrf.mxu0 }
 0x2f1   : > { %666 = vst.msk [vmem:[%s485_s11] sm:$0xff] %vm506_vm0, %v654_v46 }
 0x2f6   : > { %v657_v47 = vpop.f32.mrf.mxu3 }
 0x2f7   : > { %667 = vst.msk [vmem:[%s485_s11 + $0x8] sm:$0xff] %vm506_vm0, %v657_v47 }
 0x2fe   : > { %v660_v48 = vpop.f32.mrf.mxu3 }
 0x2ff   : > { %668 = vst.msk [vmem:[%s485_s11 + $0x10] sm:$0xff] %vm506_vm0, %v660_v48 }
 0x306   : > { %v663_v49 = vpop.f32.mrf.mxu3 }
 0x307   : > { %669 = vst.msk [vmem:[%s485_s11 + $0x18] sm:$0xff] %vm506_vm0, %v663_v49 }
 0x308 PF: > { %s1705_s15 = sld [smem:[#allocation20_spill]]  ;;  %p1707_p3 = scmp.ge.s32.totalorder %s1320_s30, 2 }
 0x30a   : > { %p972_p8 = pnand %p1707_p3, %p1412_p6 }
 0x30c   : > { %p973_p9 = pneg %p972_p8 }
 0x30e   : > { %s708_s9 = sand.u32 1, %s1705_s15  }
 0x30f   : > { %s709_s29 = scalar_lea.sflag [#allocation4], %s708_s9 }
 0x310   : > { %1303 = dma.done.wait (%p973_p9), %s709_s29, 256  }
 0x311   : > { %1305 = vsyncadd (%p973_p9), %s709_s29, 4294967040  ;;  %s1708_s30 = sld [smem:[#allocation23_spill]]  ;;  %s1711_s27 = smov %s1312_s28 }
 0x312   : > { %s1709_s21 = sld [smem:[#allocation21_spill]] }
 0x313   : > { %s1710_s29 = sld [smem:[#allocation24_spill]] }
 0x317   : > { %p27_p12 = scmp.ge.s32.totalorder %s1708_s30, 4  }
 0x318   : > { %s1712_s28 = smov %s1709_s21 }
 0x319   :  { %29 = sbr.rel (!%p27_p12) target bundleno = 15 (0xf), region = 145 }
 0x31e   :  { %723 = vsyncpa [#allocation3], 1 }
 0x31f   :  { %725 = vsyncpa [#allocation3 + $0x1], 1 }
 0x320   :  { %726 = vsyncpa [#allocation6], 1 }
 0x321   :  { %728 = vsyncpa [#allocation6 + $0x1], 1 }
 0x322   :  { %729 = vsyncpa [#allocation9], 1 }
 0x323   :  { %730 = vsyncpa [#allocation12], 1 }
 0x324   :  { %731 = vsyncpa [#allocation4], 1 }
 0x325   :  { %733 = vsyncpa [#allocation4 + $0x1], 1 }

// kernel: tpu_custom_call.1
= control target key start
LH: loop header
LB: loop body
LE: loop exit
PB: predicated region body
PF: predicated region fallthrough
CT: control target
= control target key end

     0   :  { %s1659_s0 = inlined_call_operand.hbm [shape: f32[2,2,16,16], index: 0, kind: input, shape index: {}]   ;;  %s1660_s1 = inlined_call_operand.hbm [shape: f32[2,16,32], index: 1, kind: input, shape index: {}]   ;;  %s1661_s2 = inlined_call_operand.hbm [shape: f32[2,16,16], index: 2, kind: input, shape index: {}]   ;;  %s1662_s3 = inlined_call_operand.hbm [shape: f32[32,32], index: 3, kind: input, shape index: {}]   ;;  %s1663_s4 = inlined_call_operand.hbm [shape: f32[16,32], index: 4, kind: input, shape index: {}]   ;;  %s1664_s5 = inlined_call_operand.hbm [shape: f32[32,32], index: 5, kind: input, shape index: {}]   ;;  %s1665_s6 = inlined_call_operand.hbm [shape: f32[32,32], index: 6, kind: input, shape index: {}]   ;;  %s1666_s7 = inlined_call_operand.hbm [shape: f32[2,16,32], index: 7, kind: output, shape index: {0}]   ;;  %s1667_s8 = inlined_call_operand.vmem [shape: f32[2,32,16], index: 8, kind: output, shape index: {1}]  }
   0x1   :  { %1678 = sst [smem:[#allocation25_spill]] %s1660_s1 }
   0x2   :  { %1679 = sst [smem:[#allocation26_spill]] %s1662_s3 }
   0x3   :  { %1680 = sst [smem:[#allocation27_spill]] %s1663_s4 }
   0x4   :  { %1681 = sst [smem:[#allocation28_spill]] %s1664_s5 }
   0x5   :  { %1682 = sst [smem:[#allocation29_spill]] %s1667_s8 }
   0x6   :  { %14 = vsyncpa [#allocation3], 0 }
   0x7   :  { %16 = vsyncpa [#allocation3 + $0x1], 0 }
   0x8   :  { %17 = vsyncpa [#allocation6], 0 }
   0x9   :  { %19 = vsyncpa [#allocation6 + $0x1], 0 }
   0xa   :  { %20 = vsyncpa [#allocation9], 0 }
   0xb   :  { %21 = vsyncpa [#allocation12], 0 }
   0xc   :  { %22 = vsyncpa [#allocation4], 0 }
   0xd   :  { %24 = vsyncpa [#allocation4 + $0x1], 0  ;;  %s1377_s27 = smov 0   ;;  %s1379_s28 = smov 0  }
   0xe   :  { %s1381_s29 = smov 0   ;;  %s1383_s30 = smov 0  }
   0xf LB: > { %1683 = sst [smem:[#allocation20_spill]] %s1308_s27  ;;  %s1398_s9 = sadd.s32 4294967295, %s1320_s30   ;;  %s1320_s30 = sphi %s1383_s30, %s1708_s30   ;;  %s1316_s29 = sphi %s1381_s29, %s1710_s29   ;;  %s1312_s28 = sphi %s1379_s28, %s1712_s28   ;;  %s1308_s27 = sphi %s1377_s27, %s1711_s27  }
  0x10   : > { %1684 = sst [smem:[#allocation21_spill]] %s1316_s29  ;;  %s873_s10 = sadd.s32 4294967294, %s1320_s30  }
  0x11   : > { %p50_p0 = scmp.ne.s32.totalorder %s1312_s28, %s1308_s27  ;;  %p1675_p1 = scmp.eq.s32.totalorder %s1398_s9, 0 }
  0x12   : > { %p210_p2 = scmp.eq.s32.totalorder %s1398_s9, 1  ;;  %p216_p3 = scmp.eq.s32.totalorder %s873_s10, 1 }
  0x13   : > { %p1407_p4 = por %p1675_p1, %p50_p0  ;;  %p874_p5 = scmp.ge.s32.totalorder %s1320_s30, 1 }
  0x14   : > { %p1412_p6 = por %p216_p3, %p50_p0  ;;  %p249_p7 = scmp.lt.s32.totalorder %s1320_s30, 3 }
  0x15   : > { %s1688_s3 = sld [smem:[#allocation26_spill]]  ;;  %s1322_s17 = smov [#allocation8]  }
  0x16   : > { %s1686_s12 = scalar_select %p1412_p6, 1, 0 }
  0x17   : > { %p1420_p8 = pnand %p874_p5, %p249_p7  ;;  %s262_s18 = sshll.u32 %s1322_s17, 4  ;;  %s263_s18 = int_to_ptr.vmem [resolvable:$true] %s262_s18 }
  0x18   : > { %1687 = sst [smem:[#allocation22_spill]] %s1686_s12  ;;  %s1668_s23 = smov 128  }
  0x19   : > { %p948_p9 = pneg %p1420_p8  ;;  %s1691_s5 = sld [smem:[#allocation28_spill]] }
  0x1a   : > { %s1670_s24 = smov 8   ;;  %s1325_s25 = smov [#allocation11]  }
  0x1b   : > { %s260_s15 = sshll.u32 %s1688_s3, 4  ;;  %p1428_p10 = pnand %p948_p9, %p1675_p1  ;;  %s261_s15 = int_to_ptr.hbm [resolvable:$true] %s260_s15 }
  0x1c   : > { %s290_s26 = sshll.u32 %s1325_s25, 4  ;;  %s1447_s10 = sadd.s32 1, %s1320_s30   ;;  %s291_s26 = int_to_ptr.vmem [resolvable:$true] %s290_s26 }
  0x1d   : > { %951 = dma.hbm_to_vmem [thread:$0]  (!%p1428_p10), %s261_s15, 512, %s263_s18, [#allocation9], %s1668_s23, %s1668_s23, %s1670_s24  }
  0x1e   : > { %1692 = sst [smem:[#allocation23_spill]] %s1447_s10  ;;  %s37_s13 = sadd.s32 1, %s1316_s29 }
  0x1f   : > { %s288_s22 = sshll.u32 %s1691_s5, 4  ;;  %s34_s14 = ssub.s32 %s1320_s30, %s1447_s10  ;;  %s289_s22 = int_to_ptr.hbm [resolvable:$true] %s288_s22 }
  0x20   : > { %957 = dma.hbm_to_vmem [thread:$0]  (!%p1428_p10), %s289_s22, 512, %s291_s26, [#allocation12], %s1668_s23, %s1668_s23, %s1670_s24  }
  0x21   : > { %p44_p12 = scmp.ne.s32.totalorder %s1316_s29, %s1312_s28  ;;  %p35_p13 = scmp.eq.s32.totalorder %s34_s14, 0 }
  0x22   : > { %p45_p0 = scmp.eq.s32.totalorder %s1320_s30, 0  ;;  %p979_p5 = scmp.lt.s32.totalorder %s1320_s30, 2 }
  0x23   : > { %p1457_p3 = por %p210_p2, %p44_p12  ;;  %s1466_s18 = sand.u32 1, %s1316_s29  }
  0x24   : > { %s1463_s17 = scalar_select %p35_p13, %s1316_s29, %s37_s13  }
  0x25   : > { %p46_p7 = por %p45_p0, %p44_p12  ;;  %s340_s20 = sand.u32 1, %s1320_s30  }
  0x26   : > { %1694 = sst [smem:[#allocation24_spill]] %s1463_s17  ;;  %s883_s21 = sshll.u32 %s1466_s18, 4 }
  0x27   : > { %p1470_p9 = pnand %p979_p5, %p46_p7  ;;  %s916_s25 = sshll.u32 %s1320_s30, 4 }
  0x28   : > { %s1696_s1 = sld [smem:[#allocation25_spill]]  ;;  %s344_s13 = scalar_lea.vmem [#allocation5], %s883_s21 }
  0x29   : > { %s352_s3 = sshll.u32 %s344_s13, 4  ;;  %s1478_s5 = scalar_lea.sflag [#allocation6], %s340_s20  ;;  %s353_s3 = int_to_ptr.vmem [resolvable:$true] %s352_s3 }
  0x2a   : > { %p1096_p12 = pneg %p1470_p9 }
  0x2e   : > { %s349_s23 = scalar_lea.hbm %s1696_s1, %s916_s25 }
  0x2f   : > { %s350_s24 = sshll.u32 %s349_s23, 4  ;;  %s1099_s23 = scalar_lea.hbm %s1696_s1, 32  ;;  %s351_s24 = int_to_ptr.hbm [resolvable:$true] %s350_s24 }
  0x30   : > { %s1092_s17 = sshra.s32 %s351_s24, 4  ;;  %s1093_s17 = int_to_ptr.hbm [resolvable:$true] %s1092_s17 }
  0x31   : > { %s1094_s29 = scalar_lea.hbm %s1093_s17, 16  ;;  %p1100_p5 = scmp.lt.s32.totalorder %s1093_s17, %s1696_s1 }
  0x32   : > { %p1095_p2 = scmp.ne.s32.totalorder %s1093_s17, %s1094_s29  ;;  %p1101_p7 = scmp.lt.s32.totalorder %s1099_s23, %s1094_s29 }
  0x34   : > { %p1097_p13 = pnand %p1096_p12, %p1095_p2  ;;  %p1102_p11 = por %p1101_p7, %p1100_p5 }
  0x36   : > { %p1098_p0 = pneg %p1097_p13 }
  0x38   : > { %p1103_p1 = pnand %p1102_p11, %p1098_p0 }
  0x3a   : > { %1106 = shalt.err (!%p1103_p1)
}
  0x3b   : > { %s1697_s20 = smov 8   ;;  %s1698_s12 = smov 128  }
  0x3c   : > { %967 = dma.hbm_to_vmem [thread:$0]  (!%p1470_p9), %s351_s24, 256, %s353_s3, %s1478_s5, %s1698_s12, %s1698_s12, %s1697_s20  }
  0x3d   : > { %s371_s10 = scalar_lea.hbm %s1661_s2, %s916_s25  ;;  %s366_s14 = scalar_lea.vmem [#allocation7], %s883_s21 }
  0x3e   : > { %s372_s26 = sshll.u32 %s371_s10, 4  ;;  %s374_s29 = sshll.u32 %s366_s14, 4  ;;  %s1500_s26 = int_to_ptr.hbm [resolvable:$true] %s372_s26  ;;  %s1502_s29 = int_to_ptr.vmem [resolvable:$true] %s374_s29 }
  0x3f   : > { %s1699_s4 = sld [smem:[#allocation27_spill]]  ;;  %s1326_s3 = smov [#allocation10]  }
  0x40   : > { %s276_s24 = sshll.u32 %s1326_s3, 4  ;;  %s302_s21 = sshll.u32 %s1665_s6, 4  ;;  %s277_s24 = int_to_ptr.vmem [resolvable:$true] %s276_s24  ;;  %s303_s21 = int_to_ptr.hbm [resolvable:$true] %s302_s21 }
  0x41   : > { %s1327_s25 = smov [#allocation13]   ;;  %s880_s14 = sshll.u32 %s1466_s18, 5 }
  0x42   : > { %s304_s10 = sshll.u32 %s1327_s25, 4  ;;  %s915_s17 = sshll.u32 %s1320_s30, 5  ;;  %s305_s10 = int_to_ptr.vmem [resolvable:$true] %s304_s10 }
  0x43   : > { %960 = dma.hbm_to_vmem [thread:$0]  (!%p1428_p10), %s303_s21, 512, %s305_s10, [#allocation12], %s1698_s12, %s1698_s12, %s1697_s20  }
  0x44   : > { %s327_s8 = scalar_lea.hbm %s1659_s0, %s915_s17  ;;  %s322_s27 = scalar_lea.vmem [#allocation2], %s880_s14 }
  0x45   : > { %s274_s13 = sshll.u32 %s1699_s4, 4  ;;  %s330_s1 = sshll.u32 %s322_s27, 4  ;;  %s275_s13 = int_to_ptr.hbm [resolvable:$true] %s274_s13  ;;  %s331_s1 = int_to_ptr.vmem [resolvable:$true] %s330_s1 }
  0x46   : > { %954 = dma.hbm_to_vmem [thread:$0]  (!%p1428_p10), %s275_s13, 256, %s277_s24, [#allocation9], %s1698_s12, %s1698_s12, %s1697_s20  }
  0x47   : > { %s328_s4 = sshll.u32 %s327_s8, 4  ;;  %s319_s13 = scalar_lea.sflag [#allocation3], %s1466_s18  ;;  %s329_s4 = int_to_ptr.hbm [resolvable:$true] %s328_s4 }
  0x48   : > { %s1182_s24 = sshra.s32 %s329_s4, 4  ;;  %s1189_s10 = scalar_lea.hbm %s1659_s0, 64  ;;  %s1183_s24 = int_to_ptr.hbm [resolvable:$true] %s1182_s24 }
  0x49   : > { %s1184_s25 = scalar_lea.hbm %s1183_s24, 32  ;;  %p1190_p10 = scmp.lt.s32.totalorder %s1183_s24, %s1659_s0 }
  0x4a   : > { %p1185_p1 = scmp.ne.s32.totalorder %s1183_s24, %s1184_s25  ;;  %p1191_p13 = scmp.lt.s32.totalorder %s1189_s10, %s1184_s25 }
  0x4c   : > { %p1187_p11 = pnand %p1185_p1, %p1096_p12  ;;  %p1192_p0 = por %p1191_p13, %p1190_p10 }
  0x4e   : > { %p1188_p2 = pneg %p1187_p11 }
  0x50   : > { %p1193_p5 = pnand %p1192_p0, %p1188_p2 }
  0x52   : > { %1196 = shalt.err (!%p1193_p5)
}
  0x53   : > { %964 = dma.hbm_to_vmem [thread:$0]  (!%p1470_p9), %s329_s4, 512, %s331_s1, %s319_s13, %s1698_s12, %s1698_s12, %s1697_s20  }
  0x54   : > { %s1212_s18 = sshra.s32 %s1500_s26, 4  ;;  %s1219_s27 = scalar_lea.hbm %s1661_s2, 32  ;;  %s1213_s18 = int_to_ptr.hbm [resolvable:$true] %s1212_s18 }
  0x55   : > { %s1214_s14 = scalar_lea.hbm %s1213_s18, 16  ;;  %p1220_p2 = scmp.lt.s32.totalorder %s1213_s18, %s1661_s2 }
  0x56   : > { %p1215_p7 = scmp.ne.s32.totalorder %s1213_s18, %s1214_s14  ;;  %p1221_p10 = scmp.lt.s32.totalorder %s1219_s27, %s1214_s14 }
  0x58   : > { %p1217_p1 = pnand %p1215_p7, %p1096_p12  ;;  %p1222_p13 = por %p1221_p10, %p1220_p2 }
  0x5a   : > { %p1218_p11 = pneg %p1217_p1 }
  0x5c   : > { %p1223_p0 = pnand %p1222_p13, %p1218_p11 }
  0x5e   : > { %1226 = shalt.err (!%p1223_p0)
}
  0x5f   : > { %970 = dma.hbm_to_vmem [thread:$0]  (!%p1470_p9), %s1500_s26, 256, %s1502_s29, %s1478_s5, %s1698_s12, %s1698_s12, %s1697_s20  }
  0x60   : > { %386 = sbr.rel (%p1420_p8) target bundleno = 776 (0x308), region = 48  ;;  %s1561_s1 = sand.u32 (!%p1420_p8), 1, %s1312_s28  }
  0x61   : > { %s890_s4 = sshll.u32 (!%p1420_p8), %s1561_s1, 5  ;;  %s389_s13 = scalar_lea.sflag (!%p1420_p8), [#allocation3], %s1561_s1 }
  0x62   : > { %s1565_s19 = scalar_lea.vmem (!%p1420_p8), [#allocation2], %s890_s4 }
  0x65   : > { %1287 = dma.done.wait (%p1407_p4), %s389_s13, 512  }
  0x66   : > { %1289 = vsyncadd (%p1407_p4), %s389_s13, 4294966784  ;;  %s398_s5 = sand.u32 1, %s1398_s9   ;;  %s1573_s12 = sshll.u32 %s1561_s1, 4 }
  0x67   : > { %s399_s16 = scalar_lea.sflag [#allocation6], %s398_s5  ;;  %s402_s22 = scalar_lea.vmem [#allocation5], %s1573_s12 }
  0x68   : > { %1291 = dma.done.wait (%p1407_p4), %s399_s16, 512  }
  0x69   : > { %1293 = vsyncadd (%p1407_p4), %s399_s16, 4294966784  ;;  %s412_s20 = scalar_lea.vmem [#allocation7], %s1573_s12  ;;  %p1700_p8 = scmp.eq.s32.totalorder %s1398_s9, 0 }
  0x6b   : > { %1295 = dma.done.wait (%p1700_p8), [#allocation9], 768   ;;  %p1701_p9 = pmov %p1700_p8 }
  0x6c   : > { %p1702_p12 = pmov %p1700_p8 }
  0x6d   : > { %1297 = vsyncadd (%p1701_p9), [#allocation9], 4294966528 }
  0x6e   : > { %1299 = dma.done.wait (%p1702_p12), [#allocation12], 1024   ;;  %p1703_p5 = pmov %p1700_p8 }
  0x6f   : > { %v488_v0 = vld [vmem:[%s1565_s19 + $0x10] sm:$0xff]  ;;  %v491_v3 = vld [vmem:[%s412_s20 + $0x8] sm:$0xff]  ;;  %v513_v7 = vld [vmem:[#allocation10] sm:$0xff]  ;;  %vm506_vm0 = vcmask 130048   ;;  %s1328_s11 = smov 16   ;;  %vm548_vm1 = vcmask 261120  }
  0x70   : > { %1301 = vsyncadd (%p1703_p5), [#allocation12], 4294966272  ;;  %v490_v1 = vld [vmem:[%s412_s20] sm:$0xff]  ;;  %v512_v4 = vld [vmem:[#allocation8 + $0x18] sm:$0xff]  ;;  %v493_v10 = vsub.f32 1.0, %v491_v3  ;;  %s1604_s26 = scalar_lea.vmem [#allocation14], %s1573_s12 }
  0x71   : > { %v492_v2 = vsub.f32 1.0, %v490_v1  ;;  %567 = vmatpush.msra.mxu1 %v512_v4  ;;  %v514_v5 = vld [vmem:[#allocation10 + $0x8] sm:$0xff]  ;;  %v511_v6 = vld [vmem:[#allocation8 + $0x10] sm:$0xff]  ;;  %v489_v11 = vld [vmem:[%s1565_s19 + $0x18] sm:$0xff]  ;;  %s1329_s29 = smov 112   ;;  %s688_s21 = sshll.u32 %s1604_s26, 4  ;;  %s689_s21 = int_to_ptr.vmem [resolvable:$true] %s688_s21 }
  0x72   : > { %535 = vmatpush.msra.mxu0 %v514_v5  ;;  %v510_v9 = vld [vmem:[#allocation8 + $0x8] sm:$0xff]  ;;  %v497_v12 = vmul.f32 %v493_v10, %v489_v11  ;;  %v509_v13 = vld [vmem:[#allocation8] sm:$0xff]  ;;  %v581_v24 = vld [vmem:[#allocation11 + $0x8] sm:$0xff]  ;;  %s919_s10 = sshll.u32 %s1398_s9, 4  ;;  %s671_s3 = scalar_lea.sflag [#allocation4], %s1561_s1 }
  0x73   : > { %v496_v8 = vmul.f32 %v492_v2, %v488_v0  ;;  %568 = vmatpush.msra.mxu1 %v511_v6  ;;  %v583_v14 = vld [vmem:[#allocation11 + $0x18] sm:$0xff]  ;;  %v582_v15 = vld [vmem:[#allocation11 + $0x10] sm:$0xff]  ;;  %v580_v25 = vld [vmem:[#allocation11] sm:$0xff]  ;;  %s687_s18 = scalar_lea.hbm %s1666_s7, %s919_s10  ;;  %s1262_s4 = scalar_lea.hbm %s1666_s7, 32 }
  0x74   : > { %536 = vmatpush.msra.mxu0 %v513_v7  ;;  %602 = vmatpush.msra.mxu2 %v583_v14  ;;  %v486_v16 = vld [vmem:[%s1565_s19] sm:$0xff]  ;;  %v487_v20 = vld [vmem:[%s1565_s19 + $0x8] sm:$0xff]  ;;  %v622_v42 = vld [vmem:[#allocation13 + $0x8] sm:$0xff]  ;;  %s690_s14 = sshll.u32 %s687_s18, 4  ;;  %s691_s14 = int_to_ptr.hbm [resolvable:$true] %s690_s14 }
  0x75   : > { %500 = vrot.lane.b32.xlu0 %v496_v8, %s1328_s11  ;;  %569 = vmatpush.msra.mxu1 %v510_v9  ;;  %v494_v17 = vmul.f32 %v492_v2, %v486_v16  ;;  %v495_v21 = vmul.f32 %v493_v10, %v487_v20  ;;  %v544_v27 = vld [vmem:[%s402_s22] sm:$0xff]  ;;  %v545_v32 = vld [vmem:[%s402_s22 + $0x8] sm:$0xff]  ;;  %s1256_s8 = sshra.s32 %s691_s14, 4  ;;  %s1257_s8 = int_to_ptr.hbm [resolvable:$true] %s1256_s8 }
  0x76   : > { %900 = vmatmul.msk.f32.vlgmr.msra.gmra.mxu0 %vm506_vm0, %v490_v1  ;;  %603 = vmatpush.msra.mxu2 %v582_v15  ;;  %v621_v43 = vld [vmem:[#allocation13] sm:$0xff]  ;;  %v623_v44 = vld [vmem:[#allocation13 + $0x10] sm:$0xff]  ;;  %v624_v45 = vld [vmem:[#allocation13 + $0x18] sm:$0xff]  ;;  %s1258_s27 = scalar_lea.hbm %s1257_s8, 16  ;;  %p1263_p11 = scmp.lt.s32.totalorder %s1257_s8, %s1666_s7 }
  0x77   : > { %570 = vmatpush.msra.mxu1 %v509_v13  ;;  %p1259_p4 = scmp.ne.s32.totalorder %s1257_s8, %s1258_s27  ;;  %p1264_p2 = scmp.lt.s32.totalorder %s1262_s4, %s1258_s27 }
  0x78   : > { %604 = vmatpush.msra.mxu2 %v581_v24 }
  0x79   : > { %p1260_p7 = pnand %p1259_p4, %p1457_p3  ;;  %p1265_p10 = por %p1264_p2, %p1263_p11 }
  0x7a   : > { %605 = vmatpush.msra.mxu2 %v580_v25 }
  0x7b   : > { %p1261_p1 = pneg %p1260_p7 }
  0x7d   : > { %502 = vrot.lane.b32.xlu0 %v497_v12, %s1328_s11  ;;  %p1266_p13 = pnand %p1265_p10, %p1261_p1 }
  0x7e   : > { %901 = vmatmul.msk.f32.gmra.mxu0 %vm506_vm0, %v491_v3 }
  0xe7   : > { %v501_v18 = vpop.permute.xlu0 %500 }
  0xe8   : > { %v507_v19 = vsel %vm506_vm0, %v494_v17, %v501_v18 }
  0xe9   : > { %902 = vmatmul.msk.f32.vlgmr.msra.gmra.mxu1 %vm548_vm1, %v507_v19 }
  0xef   : > { %v503_v22 = vpop.permute.xlu0 %502 }
  0xf0   : > { %v508_v23 = vsel %vm506_vm0, %v495_v21, %v503_v22 }
  0xf1   : > { %903 = vmatmul.msk.f32.gmra.mxu1 %vm548_vm1, %v508_v23 }
  0xf3   : > { %v538_v26 = vpop.f32.mrf.mxu0 }
  0xf4   : > { %v546_v28 = vmul.f32 %v544_v27, %v538_v26 }
  0xfb   : > { %v541_v31 = vpop.f32.mrf.mxu0 }
  0xfc   : > { %v547_v33 = vmul.f32 %v545_v32, %v541_v31 }
 0x166   : > { %v572_v29 = vpop.f32.mrf.mxu1 }
 0x167   : > { %v573_v30 = vadd.f32 %v572_v29, %v546_v28 }
 0x169   : > { %578 = vst.msk [vmem:[%s1604_s26] sm:$0xff] %vm548_vm1, %v573_v30  ;;  %904 = vmatmul.msk.f32.vlgmr.msra.gmra.mxu2 %vm548_vm1, %v573_v30 }
 0x16e   : > { %v575_v34 = vpop.f32.mrf.mxu1 }
 0x16f   : > { %v576_v35 = vadd.f32 %v575_v34, %v547_v33 }
 0x171   : > { %579 = vst.msk [vmem:[%s1604_s26 + $0x8] sm:$0xff] %vm548_vm1, %v576_v35  ;;  %905 = vmatmul.msk.f32.gmra.mxu2 %vm548_vm1, %v576_v35 }
 0x1ec   : > { %v607_v36 = vpop.f32.mrf.mxu2 }
 0x1f4   : > { %v610_v37 = vpop.f32.mrf.mxu2 }
 0x1f5   : > { %v1027_v38 = vpack.i.bf16 %v607_v36, %v610_v37 }
 0x1f7   : > { %1028 = vrot.lane.b32.xlu1 %v1027_v38, %s1329_s29 }
 0x269   : > { %v1029_v39 = vpop.permute.xlu1 %1028 }
 0x26a   : > { %v1030_v40 = vunpack.i.l.bf16 %v1029_v39  ;;  %v1031_v41 = vunpack.i.h.bf16 %v1029_v39 }
 0x26c   : > { %649 = vmatpush.msrb.mxu0 %v1030_v40  ;;  %920 = vmatpush.msra.mxu3 %v1030_v40 }
 0x26e   : > { %650 = vmatpush.msrb.mxu0 %v1031_v41  ;;  %921 = vmatpush.msra.mxu3 %v1031_v41 }
 0x270   : > { %651 = vmatpush.msrb.mxu0 %v610_v37  ;;  %922 = vmatpush.msra.mxu3 %v610_v37 }
 0x272   : > { %652 = vmatpush.msrb.mxu0 %v607_v36  ;;  %923 = vmatpush.msra.mxu3 %v607_v36 }
 0x273   : > { %907 = vmatmul.msk.f32.vlgmr.msra.gmra.mxu3 %vm548_vm1, %v622_v42  ;;  %906 = vmatmul.msk.f32.vlgmr.msrb.gmra.mxu0 %vm548_vm1, %v621_v43 }
 0x27b   : > { %908 = vmatmul.msk.f32.gmra.mxu3 %vm548_vm1, %v623_v44 }
 0x283   : > { %909 = vmatmul.msk.f32.gmra.mxu3 %vm548_vm1, %v624_v45 }
 0x284   : > { %1269 = shalt.err (!%p1266_p13)
}
 0x285   : > { %s1330_s1 = smov 128   ;;  %s1331_s5 = smov 8  }
 0x286   : > { %946 = dma.vmem_to_hbm [thread:$0]  (%p1457_p3), %s689_s21, 256, %s691_s14, %s671_s3, %s1330_s1, %s1330_s1, %s1331_s5  }
 0x287   : > { %p481_p0 = scmp.lt.s32.totalorder %s1398_s9, 1  ;;  %s1704_s20 = sld [smem:[#allocation29_spill]] }
 0x289   : > { %s1714_s9 = smov (!%p481_p0, %s1398_s9), 1 }
 0x28a   : > { %s918_s12 = sshll.u32 %s1714_s9, 5 }
 0x28d   : > { %s485_s11 = scalar_lea.vmem %s1704_s20, %s918_s12 }
 0x2f0   : > { %v654_v46 = vpop.f32.mrf.mxu0 }
 0x2f1   : > { %666 = vst.msk [vmem:[%s485_s11] sm:$0xff] %vm506_vm0, %v654_v46 }
 0x2f6   : > { %v657_v47 = vpop.f32.mrf.mxu3 }
 0x2f7   : > { %667 = vst.msk [vmem:[%s485_s11 + $0x8] sm:$0xff] %vm506_vm0, %v657_v47 }
 0x2fe   : > { %v660_v48 = vpop.f32.mrf.mxu3 }
 0x2ff   : > { %668 = vst.msk [vmem:[%s485_s11 + $0x10] sm:$0xff] %vm506_vm0, %v660_v48 }
 0x306   : > { %v663_v49 = vpop.f32.mrf.mxu3 }
 0x307   : > { %669 = vst.msk [vmem:[%s485_s11 + $0x18] sm:$0xff] %vm506_vm0, %v663_v49 }
 0x308 PF: > { %s1705_s15 = sld [smem:[#allocation20_spill]]  ;;  %p1707_p3 = scmp.ge.s32.totalorder %s1320_s30, 2 }
 0x30a   : > { %p972_p8 = pnand %p1707_p3, %p1412_p6 }
 0x30c   : > { %p973_p9 = pneg %p972_p8 }
 0x30e   : > { %s708_s9 = sand.u32 1, %s1705_s15  }
 0x30f   : > { %s709_s29 = scalar_lea.sflag [#allocation4], %s708_s9 }
 0x310   : > { %1303 = dma.done.wait (%p973_p9), %s709_s29, 256  }
 0x311   : > { %1305 = vsyncadd (%p973_p9), %s709_s29, 4294967040  ;;  %s1708_s30 = sld [smem:[#allocation23_spill]]  ;;  %s1711_s27 = smov %s1312_s28 }
 0x312   : > { %s1709_s21 = sld [smem:[#allocation21_spill]] }
 0x313   : > { %s1710_s29 = sld [smem:[#allocation24_spill]] }
 0x317   : > { %p27_p12 = scmp.ge.s32.totalorder %s1708_s30, 4  }
 0x318   : > { %s1712_s28 = smov %s1709_s21 }
 0x319   :  { %29 = sbr.rel (!%p27_p12) target bundleno = 15 (0xf), region = 145 }
 0x31e   :  { %723 = vsyncpa [#allocation3], 1 }
 0x31f   :  { %725 = vsyncpa [#allocation3 + $0x1], 1 }
 0x320   :  { %726 = vsyncpa [#allocation6], 1 }
 0x321   :  { %728 = vsyncpa [#allocation6 + $0x1], 1 }
 0x322   :  { %729 = vsyncpa [#allocation9], 1 }
 0x323   :  { %730 = vsyncpa [#allocation12], 1 }
 0x324   :  { %731 = vsyncpa [#allocation4], 1 }
 0x325   :  { %733 = vsyncpa [#allocation4 + $0x1], 1 }

</bundles_post_ra>
